<compile_context>
chip_gen: v5e
topology: v5e:2x2
jax: 0.10.0
libtpu: 0.0.40
codegen_flags: <defaults>
</compile_context>

<pallas_src>
import functools
import math

import jax
import jax.numpy as jnp
from jax.experimental import pallas as pl
from jax.experimental.pallas import tpu as pltpu


# ----------------------------------------------------------------------------
# Small helpers
# ----------------------------------------------------------------------------
def _round_up(x: int, m: int) -> int:
    return (x + m - 1) // m * m


def _pad2d(x, rows, cols):
    r, c = x.shape
    return jnp.pad(x, ((0, rows - r), (0, cols - c)))


def _spec(shape, index_map, *, buffers=None):
    """BlockSpec with optional multi-buffering.

    Falls back to a plain BlockSpec if this JAX build does not expose the
    `pipeline_mode=` kwarg / `pl.Buffered`.
    """
    if buffers is not None:
        try:
            return pl.BlockSpec(shape, index_map,
                                pipeline_mode=pl.Buffered(buffers))
        except (TypeError, AttributeError):
            pass
    return pl.BlockSpec(shape, index_map)


def _vmem_capacity_bytes() -> int:
    """Physical VMEM per core (128 MiB v5e/v6e, 64 MiB v7x); conservative fallback."""
    try:
        return int(pltpu.get_tpu_info().vmem_capacity_bytes)
    except Exception:
        return 64 * 1024 * 1024  # v7x per-TensorCore floor (most restrictive)


def _node_tiling(n: int, *, tm_pref: int = 512, tk_pref: int = 1024):
    """Pick (n_pad, tm, tk) for the tiled path.

    Never collapse below 256-wide tiles: pad the node dim up to a multiple of
    256 (cheap zero padding) instead of shrinking tiles, and use 512 / 1024
    tiles whenever they divide the padded size.
    """
    n128 = _round_up(max(n, 1), 128)
    if n128 <= tm_pref:
        return n128, n128, n128
    n_pad = _round_up(n128, 256)
    tm = tm_pref if n_pad % tm_pref == 0 else 256
    tk = 256
    for cand in (tk_pref, 512, 256):
        if n_pad % cand == 0:
            tk = cand
            break
    return n_pad, tm, tk


# ----------------------------------------------------------------------------
# Normalized adjacency, built directly at the padded size.
# ----------------------------------------------------------------------------
def normalized_adjacency_padded(edge_index, num_nodes, n_pad, dtype=jnp.bfloat16):
    """A_hat = D^{-1/2} (A + I) D^{-1/2}, messages flow src -> dst.

    Built directly at the padded (n_pad, n_pad) size; degree scaling and the
    bf16 cast are fused into ONE elementwise pass, so the only N^2 HBM passes
    before the kernel are: scatter, row-sum, scale+cast (no pad-copy, no extra
    cast).  Padded rows/cols have degree 0 and come out exactly zero, so padded
    nodes never contaminate real rows.

    Notes: duplicate edges are deduplicated by .set(1.0) (PyG sums them on
    multigraphs); out-of-range edge indices are silently dropped by XLA
    scatter OOB semantics.
    """
    src, dst = edge_index[0], edge_index[1]
    a = jnp.zeros((n_pad, n_pad), jnp.float32)
    a = a.at[dst, src].set(1.0)
    diag = jnp.arange(num_nodes)
    a = a.at[diag, diag].set(1.0)                     # self-loops, real nodes only
    deg = a.sum(axis=1)
    d_inv_sqrt = jnp.where(deg > 0, jax.lax.rsqrt(deg), 0.0)
    return (d_inv_sqrt[:, None] * a * d_inv_sqrt[None, :]).astype(dtype)


# ----------------------------------------------------------------------------
# Tiled path: ONE pallas_call per GCN layer.
#   out = [relu]( (A_hat @ X) @ W + b )
# Grid = (M-tiles over A rows, K-tiles over the A@X contraction).
# f32 accumulator in VMEM; the small weight matmul + bias + ReLU ride in the
# K epilogue so the A@X intermediate never touches HBM.
# ----------------------------------------------------------------------------
def _gcn_layer_kernel(a_ref, x_ref, w_ref, b_ref, o_ref, acc_ref, *, apply_relu):
    @pl.when(pl.program_id(1) == 0)
    def _():
        acc_ref[...] = jnp.zeros_like(acc_ref)

    acc_ref[...] += jnp.dot(a_ref[...], x_ref[...],
                            preferred_element_type=jnp.float32)

    @pl.when(pl.program_id(1) == pl.num_programs(1) - 1)
    def _():
        # Tiny (fi_pad x fo_pad) weight matmul rides on the MXU while the next
        # A row-block streams; then bias (+ ReLU) epilogue.
        h = jnp.dot(acc_ref[...].astype(jnp.bfloat16), w_ref[...],
                    preferred_element_type=jnp.float32)
        h = h + b_ref[...]
        if apply_relu:
            h = jnp.maximum(h, 0.0)
        o_ref[...] = h.astype(o_ref.dtype)


def gcn_layer(a_p, x_p, w_p, b_p, *, apply_relu, out_dtype, tm, tk):
    """One GCN layer on padded bf16 inputs: [relu]((A @ X) @ W + b)."""
    n_pad = a_p.shape[0]
    fi_pad = x_p.shape[1]
    fo_pad = w_p.shape[1]
    k_steps = n_pad // tk
    # Deeper pipeline on the HBM-bound A stream (only useful with >=3 K steps).
    a_buffers = 3 if k_steps >= 3 else None

    # Explicit scoped-VMEM limit: plenty of headroom for the small tiles here,
    # kept well under v7x's 64 MiB physical VMEM.
    tile_bytes = (3 * tm * tk * 2 + 2 * tk * fi_pad * 2 + 2 * fi_pad * fo_pad * 2
                  + tm * fi_pad * 4 + 2 * tm * fo_pad * 4)
    vmem_limit = int(min(max(32 << 20, 2 * tile_bytes), 48 << 20))

    kernel = functools.partial(_gcn_layer_kernel, apply_relu=apply_relu)
    return pl.pallas_call(
        kernel,
        out_shape=jax.ShapeDtypeStruct((n_pad, fo_pad), out_dtype),
        grid=(n_pad // tm, k_steps),
        in_specs=[
            _spec((tm, tk), lambda i, k: (i, k), buffers=a_buffers),   # A row-block
            _spec((tk, fi_pad), lambda i, k: (k, 0)),                  # X K-block
            _spec((fi_pad, fo_pad), lambda i, k: (0, 0)),              # W (resident)
            _spec((1, fo_pad), lambda i, k: (0, 0)),                   # bias
        ],
        out_specs=pl.BlockSpec((tm, fo_pad), lambda i, k: (i, 0)),
        scratch_shapes=[pltpu.VMEM((tm, fi_pad), jnp.float32)],
        compiler_params=pltpu.CompilerParams(
            dimension_semantics=("parallel", "arbitrary"),
            vmem_limit_bytes=vmem_limit),
    )(a_p, x_p, w_p, b_p)


def _tiled_forward(a_p, x, weights, biases, *, tm, tk):
    n = x.shape[0]
    n_pad = a_p.shape[0]
    num_layers = len(weights)
    h = _pad2d(x, n_pad, _round_up(weights[0].shape[0], 128)).astype(jnp.bfloat16)
    # Note: padded rows of h carry relu(b) after each layer; this is harmless
    # because the corresponding columns of A_hat are exactly zero and the final
    # output is sliced back to the real nodes.
    for l, (w, b) in enumerate(zip(weights, biases)):
        fi, fo = w.shape
        fi_pad, fo_pad = _round_up(fi, 128), _round_up(fo, 128)
        w_p = _pad2d(w, fi_pad, fo_pad).astype(jnp.bfloat16)
        b_p = _pad2d(b, 1, fo_pad).astype(jnp.float32)
        last = (l == num_layers - 1)
        h = gcn_layer(a_p, h, w_p, b_p,
                      apply_relu=not last,
                      out_dtype=jnp.float32 if last else jnp.bfloat16,
                      tm=tm, tk=tk)
    return h[:n, :weights[-1].shape[1]]


# ----------------------------------------------------------------------------
# Fused path: the whole decoder (all layers) in one pallas_call for small
# graphs.  A_hat, X and all weights stay resident in VMEM across every layer.
# ----------------------------------------------------------------------------
def _fused_gnn_kernel(a_ref, x_ref, w_ref, b_ref, o_ref, *, num_layers, ax_first):
    a = a_ref[...]                      # bf16 [Np, Np]
    h = x_ref[...]                      # bf16 [Np, Fp]
    for l in range(num_layers):
        w = w_ref[l]                    # bf16 [Fp, Fp]
        b = b_ref[l]                    # f32  [1,  Fp]
        if ax_first[l]:
            # (A @ X) @ W  -- cheaper when F_in < F_out
            t = jnp.dot(a, h, preferred_element_type=jnp.float32)
            t = jnp.dot(t.astype(jnp.bfloat16), w,
                        preferred_element_type=jnp.float32)
        else:
            # A @ (X @ W)  -- cheaper when F_out <= F_in
            t = jnp.dot(h, w, preferred_element_type=jnp.float32)
            t = jnp.dot(a, t.astype(jnp.bfloat16),
                        preferred_element_type=jnp.float32)
        t = t + b
        if l < num_layers - 1:
            h = jnp.maximum(t, 0.0).astype(jnp.bfloat16)
        else:
            o_ref[...] = t.astype(o_ref.dtype)


def _fused_footprint_bytes(n_pad, f_pad, num_layers):
    return (2 * n_pad * n_pad                 # A_hat bf16 (resident)
            + 2 * n_pad * f_pad               # X bf16
            + 2 * num_layers * f_pad * f_pad  # weight stack bf16
            + 4 * num_layers * f_pad          # bias stack f32
            + 4 * n_pad * f_pad               # f32 output
            + 8 * n_pad * f_pad)              # ~2 f32 in-kernel temporaries


def _fused_forward(a_p, x, weights, biases, *, vmem_cap):
    n = x.shape[0]
    n_pad = a_p.shape[0]
    num_layers = len(weights)
    f_dims = [x.shape[1]] + [w.shape[1] for w in weights]
    f_pad = _round_up(max(f_dims), 128)
    ax_first = tuple(w.shape[0] < w.shape[1] for w in weights)

    x_p = _pad2d(x, n_pad, f_pad).astype(jnp.bfloat16)
    w_p = jnp.stack([_pad2d(w, f_pad, f_pad) for w in weights]).astype(jnp.bfloat16)
    b_p = jnp.stack([_pad2d(b, 1, f_pad) for b in biases]).astype(jnp.float32)

    # Explicit scoped-VMEM limit: covers the single-buffered resident footprint
    # with headroom (v5e default scoped VMEM is only 16 MiB), capped well under
    # the physical per-core capacity (64 MiB on v7x).
    footprint = _fused_footprint_bytes(n_pad, f_pad, num_layers)
    vmem_limit = int(min(max(2 * footprint, 32 << 20), (3 * vmem_cap) // 4))

    kernel = functools.partial(
        _fused_gnn_kernel, num_layers=num_layers, ax_first=ax_first)

    out = pl.pallas_call(
        kernel,
        out_shape=jax.ShapeDtypeStruct((n_pad, f_pad), jnp.float32),
        grid=(1,),
        in_specs=[
            # grid=(1,) has nothing to pipeline: single-buffer the resident inputs.
            _spec((n_pad, n_pad), lambda i: (0, 0), buffers=1),            # A_hat
            _spec((n_pad, f_pad), lambda i: (0, 0), buffers=1),            # X
            _spec((num_layers, f_pad, f_pad), lambda i: (0, 0, 0), buffers=1),  # W
            _spec((num_layers, 1, f_pad), lambda i: (0, 0, 0), buffers=1),      # b
        ],
        out_specs=pl.BlockSpec((n_pad, f_pad), lambda i: (0, 0)),
        compiler_params=pltpu.CompilerParams(
            dimension_semantics=("arbitrary",),
            vmem_limit_bytes=vmem_limit),
    )(a_p, x_p, w_p, b_p)

    return out[:n, :weights[-1].shape[1]]


# ----------------------------------------------------------------------------
# Glue (plain JAX): parameter init + dispatch
# ----------------------------------------------------------------------------
def init_gnn_decoder_params(key, input_dim, hidden_dim, output_dim, num_layers=3):
    dims = [input_dim] + [hidden_dim] * (num_layers - 1) + [output_dim]
    params = []
    for l in range(num_layers):
        key, wk = jax.random.split(key)
        fan_in, fan_out = dims[l], dims[l + 1]
        limit = jnp.sqrt(6.0 / (fan_in + fan_out))  # Glorot uniform
        w = jax.random.uniform(wk, (fan_in, fan_out), jnp.float32, -limit, limit)
        b = jnp.zeros((1, fan_out), jnp.float32)
        params.append((w, b))
    return params


def gnn_decoder_forward(params, x, edge_index, *, fused_threshold_nodes=512):
    """GNNDecoder forward.

    Small graphs take the single-call fused path (A_hat + all weights resident
    in VMEM across every layer, gated by physical VMEM capacity so v7x's 64 MiB
    per core is respected).  Larger graphs take the per-layer tiled path whose
    M axis is "parallel", keeping both TensorCores busy on megacore parts.
    """
    n = x.shape[0]
    weights = [w for w, _ in params]
    biases = [b for _, b in params]
    vmem_cap = _vmem_capacity_bytes()

    max_f = max([x.shape[1]] + [w.shape[1] for w in weights])
    f_pad = _round_up(max_f, 128)
    n_pad_fused = _round_up(n, 128)
    fused_ok = (
        n <= fused_threshold_nodes
        and max_f <= 512
        and _fused_footprint_bytes(n_pad_fused, f_pad, len(weights)) <= vmem_cap // 3
    )
    if fused_ok:
        a_hat = normalized_adjacency_padded(edge_index, n, n_pad_fused)
        return _fused_forward(a_hat, x, weights, biases, vmem_cap=vmem_cap)

    n_pad, tm, tk = _node_tiling(n)
    a_hat = normalized_adjacency_padded(edge_index, n, n_pad)
    return _tiled_forward(a_hat, x, weights, biases, tm=tm, tk=tk)


# ----------------------------------------------------------------------------
# Pure-JAX f32 reference (for sanity checking)
# ----------------------------------------------------------------------------
def _reference_forward(params, x, edge_index):
    n = x.shape[0]
    src, dst = edge_index[0], edge_index[1]
    a = jnp.zeros((n, n), jnp.float32).at[dst, src].set(1.0)
    idx = jnp.arange(n)
    a = a.at[idx, idx].set(1.0)
    deg = a.sum(axis=1)
    dinv = jnp.where(deg > 0, 1.0 / jnp.sqrt(deg), 0.0)
    a_hat = dinv[:, None] * a * dinv[None, :]
    h = x
    for l, (w, b) in enumerate(params):
        h = a_hat @ (h @ w) + b
        if l < len(params) - 1:
            h = jnp.maximum(h, 0.0)
    return h


# ----------------------------------------------------------------------------
# Main
# ----------------------------------------------------------------------------
if __name__ == "__main__":
    key = jax.random.PRNGKey(0)
    input_dim, hidden_dim, output_dim, num_layers = 16, 32, 16, 3

    def ring_edges(n):
        src = jnp.arange(n, dtype=jnp.int32)
        dst = (src + 1) % n
        return jnp.stack([jnp.concatenate([src, dst]),
                          jnp.concatenate([dst, src])], axis=0)

    def check(out, ref, name):
        err = float(jnp.max(jnp.abs(out - ref)))
        scale = float(jnp.max(jnp.abs(ref))) + 1e-6
        assert err <= 0.1 * scale, f"{name}: max abs err {err} vs scale {scale}"

    # --- Small graph: fused single-call path (everything resident in VMEM).
    n1 = 8
    key, xk1, pk1 = jax.random.split(key, 3)
    x1 = jax.random.normal(xk1, (n1, input_dim), jnp.float32)
    e1 = ring_edges(n1)
    params1 = init_gnn_decoder_params(pk1, input_dim, hidden_dim, output_dim, num_layers)
    out1 = jax.block_until_ready(gnn_decoder_forward(params1, x1, e1))
    assert out1.shape == (n1, output_dim)
    check(out1, _reference_forward(params1, x1, e1), "fused")

    # --- Moderate graph, forced onto the tiled per-layer fused-epilogue path.
    n2 = 256
    key, xk2, pk2 = jax.random.split(key, 3)
    x2 = jax.random.normal(xk2, (n2, input_dim), jnp.float32)
    e2 = ring_edges(n2)
    params2 = init_gnn_decoder_params(pk2, input_dim, hidden_dim, output_dim, num_layers)
    out2 = jax.block_until_ready(
        gnn_decoder_forward(params2, x2, e2, fused_threshold_nodes=0))
    assert out2.shape == (n2, output_dim)
    check(out2, _reference_forward(params2, x2, e2), "tiled-1step")

    # --- Larger graph: exercises multi-step K accumulation + parallel M tiles
    #     (n=640 -> pad 768, 256x256 tiles, 3x3 grid, Buffered(3) on A).
    n3 = 640
    key, xk3, pk3 = jax.random.split(key, 3)
    x3 = jax.random.normal(xk3, (n3, input_dim), jnp.float32)
    e3 = ring_edges(n3)
    params3 = init_gnn_decoder_params(pk3, input_dim, hidden_dim, output_dim, num_layers)
    out3 = jax.block_until_ready(gnn_decoder_forward(params3, x3, e3))
    assert out3.shape == (n3, output_dim)
    check(out3, _reference_forward(params3, x3, e3), "tiled-multi")

    print("KERNEL_OK")
</pallas_src>

<mosaic_0001>
module attributes {stable_mosaic.version = 11 : i64} {
  func.func @_fused_gnn_kernel(%arg0: i32, %arg1: memref<128x128xbf16, #tpu.memory_space<vmem>>, %arg2: memref<128x128xbf16, #tpu.memory_space<vmem>>, %arg3: memref<3x128x128xbf16, #tpu.memory_space<vmem>>, %arg4: memref<3x1x128xf32, #tpu.memory_space<vmem>>, %arg5: memref<128x128xf32, #tpu.memory_space<vmem>>) attributes {dimension_semantics = [#tpu.dimension_semantics<arbitrary>], iteration_bounds = array<i64: 1>, scalar_prefetch = 0 : i64, scratch_operands = 0 : i64, tpu.core_type = #tpu.core_type<tc>, window_params = [{pipeline_mode = #tpu.pipeline_mode<synchronous>, transform_indices = @transform_0, window_bounds = array<i64: 128, 128>}, {pipeline_mode = #tpu.pipeline_mode<synchronous>, transform_indices = @transform_1, window_bounds = array<i64: 128, 128>}, {pipeline_mode = #tpu.pipeline_mode<synchronous>, transform_indices = @transform_2, window_bounds = array<i64: 3, 128, 128>}, {pipeline_mode = #tpu.pipeline_mode<synchronous>, transform_indices = @transform_3, window_bounds = array<i64: 3, 1, 128>}, {pipeline_mode = #tpu.pipeline_mode<synchronous>, transform_indices = @transform_4, window_bounds = array<i64: 128, 128>}]} {
    %c0 = arith.constant 0 : index
    %c0_0 = arith.constant 0 : index
    %0 = vector.load %arg1[%c0, %c0_0] : memref<128x128xbf16, #tpu.memory_space<vmem>>, vector<128x128xbf16>
    %c0_1 = arith.constant 0 : index
    %c0_2 = arith.constant 0 : index
    %1 = vector.load %arg2[%c0_1, %c0_2] : memref<128x128xbf16, #tpu.memory_space<vmem>>, vector<128x128xbf16>
    %c0_3 = arith.constant 0 : index
    %c0_4 = arith.constant 0 : index
    %c0_5 = arith.constant 0 : index
    %2 = vector.load %arg3[%c0_3, %c0_4, %c0_5] : memref<3x128x128xbf16, #tpu.memory_space<vmem>>, vector<1x128x128xbf16>
    %3 = vector.shape_cast %2 : vector<1x128x128xbf16> to vector<128x128xbf16>
    %c0_6 = arith.constant 0 : index
    %c0_7 = arith.constant 0 : index
    %c0_8 = arith.constant 0 : index
    %4 = vector.load %arg4[%c0_6, %c0_7, %c0_8] : memref<3x1x128xf32, #tpu.memory_space<vmem>>, vector<1x1x128xf32>
    %5 = vector.shape_cast %4 : vector<1x1x128xf32> to vector<1x128xf32>
    %cst = arith.constant dense<0.000000e+00> : vector<128x128xf32>
    %6 = tpu.matmul %0, %1, %cst {dimension_numbers = #tpu.dot_dimension_numbers<[1], [0], [0], [1], [0, 0, 1, 1], [], []>} : vector<128x128xbf16>, vector<128x128xbf16>, vector<128x128xf32> -> vector<128x128xf32>
    %7 = arith.truncf %6 : vector<128x128xf32> to vector<128x128xbf16>
    %cst_9 = arith.constant dense<0.000000e+00> : vector<128x128xf32>
    %8 = tpu.matmul %7, %3, %cst_9 {dimension_numbers = #tpu.dot_dimension_numbers<[1], [0], [0], [1], [0, 0, 1, 1], [], []>} : vector<128x128xbf16>, vector<128x128xbf16>, vector<128x128xf32> -> vector<128x128xf32>
    %9 = vector.broadcast %5 : vector<1x128xf32> to vector<128x128xf32>
    %10 = arith.addf %8, %9 : vector<128x128xf32>
    %cst_10 = arith.constant 0.000000e+00 : f32
    %11 = vector.broadcast %cst_10 : f32 to vector<128x128xf32>
    %12 = arith.maximumf %10, %11 : vector<128x128xf32>
    %13 = arith.truncf %12 : vector<128x128xf32> to vector<128x128xbf16>
    %c1 = arith.constant 1 : index
    %c0_11 = arith.constant 0 : index
    %c0_12 = arith.constant 0 : index
    %14 = vector.load %arg3[%c1, %c0_11, %c0_12] : memref<3x128x128xbf16, #tpu.memory_space<vmem>>, vector<1x128x128xbf16>
    %15 = vector.shape_cast %14 : vector<1x128x128xbf16> to vector<128x128xbf16>
    %c1_13 = arith.constant 1 : index
    %c0_14 = arith.constant 0 : index
    %c0_15 = arith.constant 0 : index
    %16 = vector.load %arg4[%c1_13, %c0_14, %c0_15] : memref<3x1x128xf32, #tpu.memory_space<vmem>>, vector<1x1x128xf32>
    %17 = vector.shape_cast %16 : vector<1x1x128xf32> to vector<1x128xf32>
    %cst_16 = arith.constant dense<0.000000e+00> : vector<128x128xf32>
    %18 = tpu.matmul %13, %15, %cst_16 {dimension_numbers = #tpu.dot_dimension_numbers<[1], [0], [0], [1], [0, 0, 1, 1], [], []>} : vector<128x128xbf16>, vector<128x128xbf16>, vector<128x128xf32> -> vector<128x128xf32>
    %19 = arith.truncf %18 : vector<128x128xf32> to vector<128x128xbf16>
    %cst_17 = arith.constant dense<0.000000e+00> : vector<128x128xf32>
    %20 = tpu.matmul %0, %19, %cst_17 {dimension_numbers = #tpu.dot_dimension_numbers<[1], [0], [0], [1], [0, 0, 1, 1], [], []>} : vector<128x128xbf16>, vector<128x128xbf16>, vector<128x128xf32> -> vector<128x128xf32>
    %21 = vector.broadcast %17 : vector<1x128xf32> to vector<128x128xf32>
    %22 = arith.addf %20, %21 : vector<128x128xf32>
    %cst_18 = arith.constant 0.000000e+00 : f32
    %23 = vector.broadcast %cst_18 : f32 to vector<128x128xf32>
    %24 = arith.maximumf %22, %23 : vector<128x128xf32>
    %25 = arith.truncf %24 : vector<128x128xf32> to vector<128x128xbf16>
    %c2 = arith.constant 2 : index
    %c0_19 = arith.constant 0 : index
    %c0_20 = arith.constant 0 : index
    %26 = vector.load %arg3[%c2, %c0_19, %c0_20] : memref<3x128x128xbf16, #tpu.memory_space<vmem>>, vector<1x128x128xbf16>
    %27 = vector.shape_cast %26 : vector<1x128x128xbf16> to vector<128x128xbf16>
    %c2_21 = arith.constant 2 : index
    %c0_22 = arith.constant 0 : index
    %c0_23 = arith.constant 0 : index
    %28 = vector.load %arg4[%c2_21, %c0_22, %c0_23] : memref<3x1x128xf32, #tpu.memory_space<vmem>>, vector<1x1x128xf32>
    %29 = vector.shape_cast %28 : vector<1x1x128xf32> to vector<1x128xf32>
    %cst_24 = arith.constant dense<0.000000e+00> : vector<128x128xf32>
    %30 = tpu.matmul %25, %27, %cst_24 {dimension_numbers = #tpu.dot_dimension_numbers<[1], [0], [0], [1], [0, 0, 1, 1], [], []>} : vector<128x128xbf16>, vector<128x128xbf16>, vector<128x128xf32> -> vector<128x128xf32>
    %31 = arith.truncf %30 : vector<128x128xf32> to vector<128x128xbf16>
    %cst_25 = arith.constant dense<0.000000e+00> : vector<128x128xf32>
    %32 = tpu.matmul %0, %31, %cst_25 {dimension_numbers = #tpu.dot_dimension_numbers<[1], [0], [0], [1], [0, 0, 1, 1], [], []>} : vector<128x128xbf16>, vector<128x128xbf16>, vector<128x128xf32> -> vector<128x128xf32>
    %33 = vector.broadcast %29 : vector<1x128xf32> to vector<128x128xf32>
    %34 = arith.addf %32, %33 : vector<128x128xf32>
    %c0_26 = arith.constant 0 : index
    %c0_27 = arith.constant 0 : index
    %35 = vector.load %arg5[%c0_26, %c0_27] : memref<128x128xf32, #tpu.memory_space<vmem>>, vector<128x128xf32>
    tpu.vector_store %arg5[%c0_26, %c0_27], %34 {strides = array<i32>} : memref<128x128xf32, #tpu.memory_space<vmem>>, vector<128x128xf32>,
    return
  }
  func.func @transform_0(%arg0: i32) -> (i32, i32) {
    %c0_i32 = arith.constant 0 : i32
    %c0_i32_0 = arith.constant 0 : i32
    %c0_i32_1 = arith.constant 0 : i32
    return %c0_i32, %c0_i32_0 : i32, i32
  }
  func.func @transform_1(%arg0: i32) -> (i32, i32) {
    %c0_i32 = arith.constant 0 : i32
    %c0_i32_0 = arith.constant 0 : i32
    %c0_i32_1 = arith.constant 0 : i32
    return %c0_i32, %c0_i32_0 : i32, i32
  }
  func.func @transform_2(%arg0: i32) -> (i32, i32, i32) {
    %c0_i32 = arith.constant 0 : i32
    %c0_i32_0 = arith.constant 0 : i32
    %c0_i32_1 = arith.constant 0 : i32
    %c0_i32_2 = arith.constant 0 : i32
    return %c0_i32, %c0_i32_0, %c0_i32_1 : i32, i32, i32
  }
  func.func @transform_3(%arg0: i32) -> (i32, i32, i32) {
    %c0_i32 = arith.constant 0 : i32
    %c0_i32_0 = arith.constant 0 : i32
    %c0_i32_1 = arith.constant 0 : i32
    %c0_i32_2 = arith.constant 0 : i32
    return %c0_i32, %c0_i32_0, %c0_i32_1 : i32, i32, i32
  }
  func.func @transform_4(%arg0: i32) -> (i32, i32) {
    %c0_i32 = arith.constant 0 : i32
    %c0_i32_0 = arith.constant 0 : i32
    %c0_i32_1 = arith.constant 0 : i32
    return %c0_i32, %c0_i32_0 : i32, i32
  }
}

</mosaic_0001>

<bundles_post_ra>
// kernel: tpu_custom_call.1
= control target key start
LH: loop header
LB: loop body
LE: loop exit
PB: predicated region body
PF: predicated region fallthrough
CT: control target
= control target key end

     0   :  { %9 = vsyncpa [#allocation3], 0  ;;  %s1269_s0 = inlined_call_operand.hbm [shape: bf16[128,128], index: 0, kind: input, shape index: {}]   ;;  %s1270_s1 = inlined_call_operand.hbm [shape: bf16[128,128], index: 1, kind: input, shape index: {}]   ;;  %s1271_s2 = inlined_call_operand.hbm [shape: bf16[3,128,128], index: 2, kind: input, shape index: {}]   ;;  %s1272_s3 = inlined_call_operand.hbm [shape: f32[3,1,128], index: 3, kind: input, shape index: {}]   ;;  %s1273_s4 = inlined_call_operand.hbm [shape: f32[128,128], index: 4, kind: output, shape index: {}]  }
   0x1   :  { %10 = vsyncpa [#allocation6], 0 }
   0x2   :  { %11 = vsyncpa [#allocation9], 0 }
   0x3   :  { %12 = vsyncpa [#allocation4], 0  ;;  %s30_s17 = sshll.u32 %s1270_s1, 4  ;;  %s1178_s18 = smov [#allocation5]   ;;  %s31_s17 = int_to_ptr.hbm [resolvable:$true] %s30_s17 }
   0x4   :  { %s32_s19 = sshll.u32 %s1178_s18, 4  ;;  %s17_s22 = sshll.u32 %s1269_s0, 4  ;;  %s33_s19 = int_to_ptr.vmem [resolvable:$true] %s32_s19  ;;  %s18_s22 = int_to_ptr.hbm [resolvable:$true] %s17_s22 }
   0x5   :  { %s1179_s23 = smov 64   ;;  %s1180_s24 = smov 4  }
   0x6   :  { %38 = dma.hbm_to_vmem [thread:$0]  %s31_s17, 1024, %s33_s19, [#allocation6], %s1179_s23, %s1179_s23, %s1180_s24  }
   0x7   :  { %s1181_s25 = smov [#allocation2]   ;;  %s43_s29 = sshll.u32 %s1271_s2, 4  ;;  %s44_s29 = int_to_ptr.hbm [resolvable:$true] %s43_s29 }
   0x8   :  { %s19_s26 = sshll.u32 %s1181_s25, 4  ;;  %s56_s5 = sshll.u32 %s1272_s3, 4  ;;  %s20_s26 = int_to_ptr.vmem [resolvable:$true] %s19_s26  ;;  %s57_s5 = int_to_ptr.hbm [resolvable:$true] %s56_s5 }
   0x9   :  { %25 = dma.hbm_to_vmem [thread:$0]  %s18_s22, 1024, %s20_s26, [#allocation3], %s1179_s23, %s1179_s23, %s1180_s24  }
   0xa   :  { %s1182_s6 = smov [#allocation7]   ;;  %s1183_s0 = smov [#allocation8]  }
   0xb   :  { %s45_s7 = sshll.u32 %s1182_s6, 4  ;;  %s58_s8 = sshll.u32 %s1183_s0, 4  ;;  %s46_s7 = int_to_ptr.vmem [resolvable:$true] %s45_s7  ;;  %s59_s8 = int_to_ptr.vmem [resolvable:$true] %s58_s8 }
   0xc   :  { %51 = dma.hbm_to_vmem [thread:$0]  %s44_s29, 3072, %s46_s7, [#allocation6], %s1179_s23, %s1179_s23, %s1180_s24  }
   0xd   :  { %s1184_s9 = smov 16   ;;  %s1185_s10 = smov 1  }
   0xe   :  { %64 = dma.hbm_to_vmem [thread:$0]  %s57_s5, 48, %s59_s8, [#allocation9], %s1184_s9, %s1184_s9, %s1185_s10  }
   0xf   :  { %1170 = dma.done.wait [#allocation3], 1024  }
  0x10   :  { %1171 = vsyncadd [#allocation3], 4294966272 }
  0x11   :  { %1172 = dma.done.wait [#allocation6], 4096  }
  0x12   :  { %1173 = vsyncadd [#allocation6], 4294963200 }
  0x13   :  { %1174 = dma.done.wait [#allocation9], 48  }
  0x14   :  { %1175 = vsyncadd [#allocation9], 4294967248  ;;  %v995_v0 = vld [vmem:[#allocation5 + $0x38] sm:$0xff]  ;;  %v994_v1 = vld [vmem:[#allocation5 + $0x30] sm:$0xff]  ;;  %s1186_s2 = smov [#allocation10]   ;;  %s805_s13 = sshll.u32 %s1273_s4, 4  ;;  %s806_s13 = int_to_ptr.hbm [resolvable:$true] %s805_s13 }
  0x15   :  { %226 = vmatpush.bf16.msra.mxu0 %v995_v0  ;;  %1020 = vmatpush.bf16.msra.mxu2 %v995_v0  ;;  %v993_v2 = vld [vmem:[#allocation5 + $0x28] sm:$0xff]  ;;  %v992_v3 = vld [vmem:[#allocation5 + $0x20] sm:$0xff]  ;;  %v991_v4 = vld [vmem:[#allocation5 + $0x18] sm:$0xff]  ;;  %s803_s3 = sshll.u32 %s1186_s2, 4  ;;  %s1187_s14 = smov 128   ;;  %s804_s3 = int_to_ptr.vmem [resolvable:$true] %s803_s3 }
  0x16   :  { %v990_v5 = vld [vmem:[#allocation5 + $0x10] sm:$0xff]  ;;  %v989_v6 = vld [vmem:[#allocation5 + $0x8] sm:$0xff]  ;;  %v988_v7 = vld [vmem:[#allocation5] sm:$0xff]  ;;  %s1188_s15 = smov 8  }
  0x17   :  { %v1226_v8 = vld [vmem:[#allocation2] sm:$0xff]  ;;  %v1232_v10 = vld [vmem:[#allocation2 + $0x8] sm:$0xff]  ;;  %v1003_v12 = vld [vmem:[#allocation7 + $0x38] sm:$0xff] }
  0x18   :  { %v1229_v9 = vld [vmem:[#allocation2 + $0x20] sm:$0xff]  ;;  %v1235_v11 = vld [vmem:[#allocation2 + $0x28] sm:$0xff]  ;;  %334 = vmatpush.bf16.msra.mxu1 %v1003_v12  ;;  %v1002_v13 = vld [vmem:[#allocation7 + $0x30] sm:$0xff]  ;;  %1028 = vmatpush.bf16.msra.mxu3 %v1003_v12 }
  0x19   :  { %227 = vmatpush.bf16.msra.mxu0 %v994_v1  ;;  %1021 = vmatpush.bf16.msra.mxu2 %v994_v1  ;;  %v1001_v14 = vld [vmem:[#allocation7 + $0x28] sm:$0xff]  ;;  %v1238_v15 = vld [vmem:[#allocation2 + $0x10] sm:$0xff]  ;;  %v1000_v16 = vld [vmem:[#allocation7 + $0x20] sm:$0xff] }
  0x1a   :  { %v1240_v17 = vld [vmem:[#allocation2 + $0x30] sm:$0xff]  ;;  %v999_v18 = vld [vmem:[#allocation7 + $0x18] sm:$0xff]  ;;  %v997_v22 = vld [vmem:[#allocation7 + $0x8] sm:$0xff] }
  0x1b   :  { %v1244_v19 = vld [vmem:[#allocation2 + $0x18] sm:$0xff]  ;;  %v998_v21 = vld [vmem:[#allocation7 + $0x10] sm:$0xff]  ;;  %v996_v23 = vld [vmem:[#allocation7] sm:$0xff] }
  0x1c   :  { %335 = vmatpush.bf16.msra.mxu1 %v1002_v13  ;;  %1029 = vmatpush.bf16.msra.mxu3 %v1002_v13  ;;  %v1246_v20 = vld [vmem:[#allocation2 + $0x38] sm:$0xff]  ;;  %v1010_v38 = vld [vmem:[#allocation7 + $0x70] sm:$0xff]  ;;  %v1009_v42 = vld [vmem:[#allocation7 + $0x68] sm:$0xff] }
  0x1d   :  { %228 = vmatpush.bf16.msra.mxu0 %v993_v2  ;;  %1022 = vmatpush.bf16.msra.mxu2 %v993_v2  ;;  %v1011_v37 = vld [vmem:[#allocation7 + $0x78] sm:$0xff]  ;;  %v1008_v43 = vld [vmem:[#allocation7 + $0x60] sm:$0xff]  ;;  %v1006_v53 = vld [vmem:[#allocation7 + $0x50] sm:$0xff] }
  0x1e   :  { %v1007_v52 = vld [vmem:[#allocation7 + $0x58] sm:$0xff]  ;;  %v1005_v54 = vld [vmem:[#allocation7 + $0x48] sm:$0xff]  ;;  %v1004_v55 = vld [vmem:[#allocation7 + $0x40] sm:$0xff] }
  0x1f   :  { %v1047_v57 = vld [vmem:[#allocation8] ss:$0 sm:$0xff] }
  0x20   :  { %336 = vmatpush.bf16.msra.mxu1 %v1001_v14  ;;  %1030 = vmatpush.bf16.msra.mxu3 %v1001_v14 }
  0x21   :  { %229 = vmatpush.bf16.msra.mxu0 %v992_v3  ;;  %1023 = vmatpush.bf16.msra.mxu2 %v992_v3 }
  0x24   :  { %337 = vmatpush.bf16.msra.mxu1 %v1000_v16  ;;  %1031 = vmatpush.bf16.msra.mxu3 %v1000_v16 }
  0x25   :  { %230 = vmatpush.bf16.msra.mxu0 %v991_v4  ;;  %1024 = vmatpush.bf16.msra.mxu2 %v991_v4 }
  0x28   :  { %338 = vmatpush.bf16.msra.mxu1 %v999_v18  ;;  %1032 = vmatpush.bf16.msra.mxu3 %v999_v18 }
  0x29   :  { %231 = vmatpush.bf16.msra.mxu0 %v990_v5  ;;  %1025 = vmatpush.bf16.msra.mxu2 %v990_v5 }
  0x2c   :  { %339 = vmatpush.bf16.msra.mxu1 %v998_v21  ;;  %1033 = vmatpush.bf16.msra.mxu3 %v998_v21 }
  0x2d   :  { %232 = vmatpush.bf16.msra.mxu0 %v989_v6  ;;  %1026 = vmatpush.bf16.msra.mxu2 %v989_v6 }
  0x30   :  { %340 = vmatpush.bf16.msra.mxu1 %v997_v22  ;;  %1034 = vmatpush.bf16.msra.mxu3 %v997_v22 }
  0x31   :  { %233 = vmatpush.bf16.msra.mxu0 %v988_v7  ;;  %1027 = vmatpush.bf16.msra.mxu2 %v988_v7 }
  0x34   :  { %234 = vmatmul.bf16.vlgmr.msra.gmra.mxu0 %v1226_v8  ;;  %254 = vmatmul.bf16.vlgmr.msra.gmra.mxu2 %v1229_v9 }
  0x35   :  { %341 = vmatpush.bf16.msra.mxu1 %v996_v23  ;;  %1035 = vmatpush.bf16.msra.mxu3 %v996_v23 }
  0x36   :  { %474 = vmatpush.bf16.msrb.mxu2 %v1011_v37 }
  0x3a   :  { %475 = vmatpush.bf16.msrb.mxu2 %v1010_v38 }
  0x3e   :  { %476 = vmatpush.bf16.msrb.mxu2 %v1009_v42 }
  0x42   :  { %477 = vmatpush.bf16.msrb.mxu2 %v1008_v43 }
  0x44   :  { %239 = vmatmul.bf16.gmra.mxu0 %v1232_v10  ;;  %259 = vmatmul.bf16.gmra.mxu2 %v1235_v11 }
  0x46   :  { %478 = vmatpush.bf16.msrb.mxu2 %v1007_v52 }
  0x4a   :  { %479 = vmatpush.bf16.msrb.mxu2 %v1006_v53 }
  0x4e   :  { %480 = vmatpush.bf16.msrb.mxu2 %v1005_v54 }
  0x52   :  { %481 = vmatpush.bf16.msrb.mxu2 %v1004_v55 }
  0x54   :  { %244 = vmatmul.bf16.gmra.mxu0 %v1238_v15  ;;  %264 = vmatmul.bf16.gmra.mxu2 %v1240_v17 }
  0x64   :  { %249 = vmatmul.bf16.gmra.mxu0 %v1244_v19  ;;  %269 = vmatmul.bf16.gmra.mxu2 %v1246_v20 }
  0xb1   :  { %v235_v24 = vpop.f32.mrf.mxu0 }
  0xb7   :  { %v255_v27 = vpop.f32.mrf.mxu2 }
  0xb9   :  { %v237_v25 = vpop.f32.mrf.mxu0 }
  0xba   :  { %v275_v26 = vpack.c.bf16 %v237_v25, %v235_v24 }
  0xbc   :  { %342 = vmatmul.bf16.vlgmr.msra.gmra.mxu1 %v275_v26 }
  0xbf   :  { %v257_v29 = vpop.f32.mrf.mxu2 }
  0xc0   :  { %v279_v30 = vpack.c.bf16 %v257_v29, %v255_v27 }
  0xc1   :  { %v240_v28 = vpop.f32.mrf.mxu0 }
  0xc2   :  { %362 = vmatmul.bf16.vlgmr.msra.gmra.mxu3 %v279_v30 }
  0xc7   :  { %v260_v33 = vpop.f32.mrf.mxu2 }
  0xc9   :  { %v242_v31 = vpop.f32.mrf.mxu0 }
  0xca   :  { %v276_v32 = vpack.c.bf16 %v242_v31, %v240_v28 }
  0xcc   :  { %347 = vmatmul.bf16.gmra.mxu1 %v276_v32 }
  0xcf   :  { %v262_v35 = vpop.f32.mrf.mxu2 }
  0xd0   :  { %v280_v36 = vpack.c.bf16 %v262_v35, %v260_v33 }
  0xd1   :  { %v245_v34 = vpop.f32.mrf.mxu0 }
  0xd2   :  { %367 = vmatmul.bf16.gmra.mxu3 %v280_v36 }
  0xd7   :  { %v265_v41 = vpop.f32.mrf.mxu2 }
  0xd9   :  { %v247_v39 = vpop.f32.mrf.mxu0 }
  0xda   :  { %v277_v40 = vpack.c.bf16 %v247_v39, %v245_v34 }
  0xdc   :  { %352 = vmatmul.bf16.gmra.mxu1 %v277_v40 }
  0xdf   :  { %v267_v45 = vpop.f32.mrf.mxu2 }
  0xe0   :  { %v281_v46 = vpack.c.bf16 %v267_v45, %v265_v41 }
  0xe1   :  { %v250_v44 = vpop.f32.mrf.mxu0 }
  0xe2   :  { %372 = vmatmul.bf16.gmra.mxu3 %v281_v46 }
  0xe7   :  { %v270_v49 = vpop.f32.mrf.mxu2 }
  0xe9   :  { %v252_v47 = vpop.f32.mrf.mxu0 }
  0xea   :  { %v278_v48 = vpack.c.bf16 %v252_v47, %v250_v44 }
  0xec   :  { %357 = vmatmul.bf16.gmra.mxu1 %v278_v48 }
  0xef   :  { %v272_v50 = vpop.f32.mrf.mxu2 }
  0xf0   :  { %v282_v51 = vpack.c.bf16 %v272_v50, %v270_v49 }
  0xf2   :  { %377 = vmatmul.bf16.gmra.mxu3 %v282_v51 }
 0x139   :  { %v343_v56 = vpop.f32.mrf.mxu1 }
 0x13a   :  { %v344_v58 = vadd.f32 %v1047_v57, %v343_v56 }
 0x13c   :  { %v383_v61 = vmax.f32 %v344_v58, 0.0 }
 0x141   :  { %v345_v59 = vpop.f32.mrf.mxu1 }
 0x142   :  { %v346_v60 = vadd.f32 %v1047_v57, %v345_v59 }
 0x144   :  { %v384_v62 = vmax.f32 %v346_v60, 0.0 }
 0x145   :  { %v363_v21 = vpop.f32.mrf.mxu3 }
 0x146   :  { %v399_v63 = vpack.c.bf16 %v384_v62, %v383_v61  ;;  %v364_v32 = vadd.f32 %v1047_v57, %v363_v21 }
 0x148   :  { %482 = vmatmul.bf16.vlgmr.msrb.gmra.mxu2 %v399_v63  ;;  %v391_v34 = vmax.f32 %v364_v32, 0.0  ;;  %v1012_v32 = vld [vmem:[#allocation7 + $0x80] sm:$0xff] }
 0x149   :  { %v348_v0 = vpop.f32.mrf.mxu1 }
 0x14a   :  { %v349_v1 = vadd.f32 %v1047_v57, %v348_v0 }
 0x14c   :  { %v385_v4 = vmax.f32 %v349_v1, 0.0 }
 0x14d   :  { %v365_v24 = vpop.f32.mrf.mxu3 }
 0x14e   :  { %v366_v33 = vadd.f32 %v1047_v57, %v365_v24 }
 0x150   :  { %v392_v35 = vmax.f32 %v366_v33, 0.0 }
 0x151   :  { %v350_v2 = vpop.f32.mrf.mxu1 }
 0x152   :  { %v351_v3 = vadd.f32 %v1047_v57, %v350_v2  ;;  %v403_v37 = vpack.c.bf16 %v392_v35, %v391_v34  ;;  %v1048_v34 = vld [vmem:[#allocation8 + $0x1] ss:$0 sm:$0xff] }
 0x154   :  { %v386_v5 = vmax.f32 %v351_v3, 0.0 }
 0x155   :  { %v368_v31 = vpop.f32.mrf.mxu3 }
 0x156   :  { %v400_v6 = vpack.c.bf16 %v386_v5, %v385_v4  ;;  %v369_v39 = vadd.f32 %v1047_v57, %v368_v31  ;;  %v1013_v31 = vld [vmem:[#allocation7 + $0x88] sm:$0xff] }
 0x158   :  { %487 = vmatmul.bf16.gmra.mxu2 %v400_v6  ;;  %v393_v41 = vmax.f32 %v369_v39, 0.0 }
 0x159   :  { %v353_v7 = vpop.f32.mrf.mxu1 }
 0x15a   :  { %v354_v12 = vadd.f32 %v1047_v57, %v353_v7 }
 0x15c   :  { %v387_v16 = vmax.f32 %v354_v12, 0.0 }
 0x15d   :  { %v370_v36 = vpop.f32.mrf.mxu3 }
 0x15e   :  { %v371_v40 = vadd.f32 %v1047_v57, %v370_v36 }
 0x160   :  { %v394_v42 = vmax.f32 %v371_v40, 0.0 }
 0x161   :  { %v355_v13 = vpop.f32.mrf.mxu1 }
 0x162   :  { %v356_v14 = vadd.f32 %v1047_v57, %v355_v13  ;;  %v404_v43 = vpack.c.bf16 %v394_v42, %v393_v41 }
 0x164   :  { %v388_v18 = vmax.f32 %v356_v14, 0.0 }
 0x165   :  { %v373_v38 = vpop.f32.mrf.mxu3 }
 0x166   :  { %v401_v22 = vpack.c.bf16 %v388_v18, %v387_v16  ;;  %v374_v45 = vadd.f32 %v1047_v57, %v373_v38 }
 0x168   :  { %492 = vmatmul.bf16.gmra.mxu2 %v401_v22  ;;  %v395_v48 = vmax.f32 %v374_v45, 0.0 }
 0x169   :  { %v358_v23 = vpop.f32.mrf.mxu1 }
 0x16a   :  { %v359_v25 = vadd.f32 %v1047_v57, %v358_v23 }
 0x16c   :  { %v389_v28 = vmax.f32 %v359_v25, 0.0  ;;  %v1019_v25 = vld [vmem:[#allocation7 + $0xb8] sm:$0xff] }
 0x16d   :  { %v375_v44 = vpop.f32.mrf.mxu3  ;;  %674 = vmatpush.bf16.msrb.mxu0 %v1019_v25 }
 0x16e   :  { %v376_v46 = vadd.f32 %v1047_v57, %v375_v44 }
 0x170   :  { %v396_v49 = vmax.f32 %v376_v46, 0.0 }
 0x171   :  { %v360_v26 = vpop.f32.mrf.mxu1 }
 0x172   :  { %v361_v27 = vadd.f32 %v1047_v57, %v360_v26  ;;  %v405_v50 = vpack.c.bf16 %v396_v49, %v395_v48  ;;  %v1018_v26 = vld [vmem:[#allocation7 + $0xb0] sm:$0xff] }
 0x173   :  { %675 = vmatpush.bf16.msrb.mxu0 %v1018_v26 }
 0x174   :  { %v390_v29 = vmax.f32 %v361_v27, 0.0  ;;  %v1017_v27 = vld [vmem:[#allocation7 + $0xa8] sm:$0xff] }
 0x175   :  { %v378_v47 = vpop.f32.mrf.mxu3 }
 0x176   :  { %v402_v30 = vpack.c.bf16 %v390_v29, %v389_v28  ;;  %v379_v52 = vadd.f32 %v1047_v57, %v378_v47  ;;  %v1016_v28 = vld [vmem:[#allocation7 + $0xa0] sm:$0xff]  ;;  %v1015_v29 = vld [vmem:[#allocation7 + $0x98] sm:$0xff] }
 0x177   :  { %676 = vmatpush.bf16.msrb.mxu0 %v1017_v27 }
 0x178   :  { %497 = vmatmul.bf16.gmra.mxu2 %v402_v30  ;;  %v397_v54 = vmax.f32 %v379_v52, 0.0  ;;  %v1014_v30 = vld [vmem:[#allocation7 + $0x90] sm:$0xff] }
 0x17b   :  { %677 = vmatpush.bf16.msrb.mxu0 %v1016_v28 }
 0x17d   :  { %v380_v51 = vpop.f32.mrf.mxu3 }
 0x17e   :  { %v381_v53 = vadd.f32 %v1047_v57, %v380_v51 }
 0x17f   :  { %678 = vmatpush.bf16.msrb.mxu0 %v1015_v29 }
 0x180   :  { %v398_v55 = vmax.f32 %v381_v53, 0.0 }
 0x182   :  { %v406_v56 = vpack.c.bf16 %v398_v55, %v397_v54 }
 0x183   :  { %679 = vmatpush.bf16.msrb.mxu0 %v1014_v30 }
 0x187   :  { %680 = vmatpush.bf16.msrb.mxu0 %v1013_v31 }
 0x188   :  { %502 = vmatmul.bf16.gmra.mxu2 %v403_v37 }
 0x18b   :  { %681 = vmatpush.bf16.msrb.mxu0 %v1012_v32 }
 0x198   :  { %507 = vmatmul.bf16.gmra.mxu2 %v404_v43 }
 0x1a8   :  { %512 = vmatmul.bf16.gmra.mxu2 %v405_v50 }
 0x1b8   :  { %517 = vmatmul.bf16.gmra.mxu2 %v406_v56 }
 0x1cb   :  { %v483_v58 = vpop.f32.mrf.mxu2 }
 0x1d3   :  { %v485_v59 = vpop.f32.mrf.mxu2 }
 0x1d4   :  { %v523_v60 = vpack.c.bf16 %v485_v59, %v483_v58 }
 0x1db   :  { %v488_v61 = vpop.f32.mrf.mxu2 }
 0x1e3   :  { %v490_v62 = vpop.f32.mrf.mxu2 }
 0x1e4   :  { %v524_v63 = vpack.c.bf16 %v490_v62, %v488_v61 }
 0x1eb   :  { %v493_v0 = vpop.f32.mrf.mxu2 }
 0x1f3   :  { %v495_v1 = vpop.f32.mrf.mxu2 }
 0x1f4   :  { %v525_v2 = vpack.c.bf16 %v495_v1, %v493_v0 }
 0x1fb   :  { %v498_v3 = vpop.f32.mrf.mxu2 }
 0x203   :  { %v500_v4 = vpop.f32.mrf.mxu2 }
 0x204   :  { %v526_v5 = vpack.c.bf16 %v500_v4, %v498_v3 }
 0x20b   :  { %v503_v6 = vpop.f32.mrf.mxu2 }
 0x213   :  { %v505_v7 = vpop.f32.mrf.mxu2 }
 0x214   :  { %v527_v24 = vpack.c.bf16 %v505_v7, %v503_v6 }
 0x21b   :  { %v508_v12 = vpop.f32.mrf.mxu2 }
 0x223   :  { %v510_v57 = vpop.f32.mrf.mxu2 }
 0x224   :  { %v528_v23 = vpack.c.bf16 %v510_v57, %v508_v12 }
 0x22b   :  { %v513_v13 = vpop.f32.mrf.mxu2 }
 0x233   :  { %v515_v14 = vpop.f32.mrf.mxu2 }
 0x234   :  { %v529_v22 = vpack.c.bf16 %v515_v14, %v513_v13 }
 0x23b   :  { %v518_v16 = vpop.f32.mrf.mxu2 }
 0x243   :  { %v520_v18 = vpop.f32.mrf.mxu2 }
 0x244   :  { %v530_v21 = vpack.c.bf16 %v520_v18, %v518_v16 }
 0x246   :  { %534 = vmatpush.bf16.msrb.mxu3 %v530_v21 }
 0x24a   :  { %535 = vmatpush.bf16.msrb.mxu3 %v529_v22 }
 0x24e   :  { %536 = vmatpush.bf16.msrb.mxu3 %v528_v23 }
 0x252   :  { %537 = vmatpush.bf16.msrb.mxu3 %v527_v24 }
 0x256   :  { %538 = vmatpush.bf16.msrb.mxu3 %v526_v5 }
 0x25a   :  { %539 = vmatpush.bf16.msrb.mxu3 %v525_v2 }
 0x25e   :  { %540 = vmatpush.bf16.msrb.mxu3 %v524_v63 }
 0x262   :  { %541 = vmatpush.bf16.msrb.mxu3 %v523_v60 }
 0x265   :  { %542 = vmatmul.bf16.vlgmr.msrb.gmra.mxu3 %v1226_v8 }
 0x275   :  { %547 = vmatmul.bf16.gmra.mxu3 %v1232_v10 }
 0x285   :  { %552 = vmatmul.bf16.gmra.mxu3 %v1238_v15 }
 0x295   :  { %557 = vmatmul.bf16.gmra.mxu3 %v1244_v19 }
 0x2a5   :  { %562 = vmatmul.bf16.gmra.mxu3 %v1229_v9 }
 0x2b5   :  { %567 = vmatmul.bf16.gmra.mxu3 %v1235_v11 }
 0x2c5   :  { %572 = vmatmul.bf16.gmra.mxu3 %v1240_v17 }
 0x2d5   :  { %577 = vmatmul.bf16.gmra.mxu3 %v1246_v20 }
 0x2e8   :  { %v543_v33 = vpop.f32.mrf.mxu3 }
 0x2e9   :  { %v544_v35 = vadd.f32 %v1048_v34, %v543_v33 }
 0x2eb   :  { %v583_v38 = vmax.f32 %v544_v35, 0.0 }
 0x2f0   :  { %v545_v36 = vpop.f32.mrf.mxu3 }
 0x2f1   :  { %v546_v37 = vadd.f32 %v1048_v34, %v545_v36 }
 0x2f3   :  { %v584_v39 = vmax.f32 %v546_v37, 0.0 }
 0x2f5   :  { %v599_v40 = vpack.c.bf16 %v584_v39, %v583_v38 }
 0x2f7   :  { %682 = vmatmul.bf16.vlgmr.msrb.gmra.mxu0 %v599_v40 }
 0x2f8   :  { %v548_v41 = vpop.f32.mrf.mxu3 }
 0x2f9   :  { %v549_v42 = vadd.f32 %v1048_v34, %v548_v41 }
 0x2fb   :  { %v585_v45 = vmax.f32 %v549_v42, 0.0 }
 0x300   :  { %v550_v43 = vpop.f32.mrf.mxu3 }
 0x301   :  { %v551_v44 = vadd.f32 %v1048_v34, %v550_v43 }
 0x303   :  { %v586_v46 = vmax.f32 %v551_v44, 0.0 }
 0x305   :  { %v600_v47 = vpack.c.bf16 %v586_v46, %v585_v45 }
 0x307   :  { %687 = vmatmul.bf16.gmra.mxu0 %v600_v47 }
 0x308   :  { %v553_v48 = vpop.f32.mrf.mxu3 }
 0x309   :  { %v554_v49 = vadd.f32 %v1048_v34, %v553_v48 }
 0x30b   :  { %v587_v52 = vmax.f32 %v554_v49, 0.0 }
 0x310   :  { %v555_v50 = vpop.f32.mrf.mxu3 }
 0x311   :  { %v556_v51 = vadd.f32 %v1048_v34, %v555_v50 }
 0x313   :  { %v588_v53 = vmax.f32 %v556_v51, 0.0 }
 0x315   :  { %v601_v54 = vpack.c.bf16 %v588_v53, %v587_v52 }
 0x317   :  { %692 = vmatmul.bf16.gmra.mxu0 %v601_v54 }
 0x318   :  { %v558_v55 = vpop.f32.mrf.mxu3 }
 0x319   :  { %v559_v56 = vadd.f32 %v1048_v34, %v558_v55 }
 0x31b   :  { %v589_v60 = vmax.f32 %v559_v56, 0.0 }
 0x320   :  { %v560_v58 = vpop.f32.mrf.mxu3 }
 0x321   :  { %v561_v59 = vadd.f32 %v1048_v34, %v560_v58 }
 0x323   :  { %v590_v61 = vmax.f32 %v561_v59, 0.0  ;;  %v1049_v59 = vld [vmem:[#allocation8 + $0x2] ss:$0 sm:$0xff] }
 0x325   :  { %v602_v62 = vpack.c.bf16 %v590_v61, %v589_v60 }
 0x327   :  { %697 = vmatmul.bf16.gmra.mxu0 %v602_v62 }
 0x328   :  { %v563_v63 = vpop.f32.mrf.mxu3 }
 0x329   :  { %v564_v0 = vadd.f32 %v1048_v34, %v563_v63 }
 0x32b   :  { %v591_v3 = vmax.f32 %v564_v0, 0.0 }
 0x330   :  { %v565_v1 = vpop.f32.mrf.mxu3 }
 0x331   :  { %v566_v2 = vadd.f32 %v1048_v34, %v565_v1 }
 0x333   :  { %v592_v4 = vmax.f32 %v566_v2, 0.0 }
 0x335   :  { %v603_v5 = vpack.c.bf16 %v592_v4, %v591_v3 }
 0x337   :  { %702 = vmatmul.bf16.gmra.mxu0 %v603_v5 }
 0x338   :  { %v568_v6 = vpop.f32.mrf.mxu3 }
 0x339   :  { %v569_v7 = vadd.f32 %v1048_v34, %v568_v6 }
 0x33b   :  { %v593_v13 = vmax.f32 %v569_v7, 0.0 }
 0x340   :  { %v570_v12 = vpop.f32.mrf.mxu3 }
 0x341   :  { %v571_v57 = vadd.f32 %v1048_v34, %v570_v12 }
 0x343   :  { %v594_v14 = vmax.f32 %v571_v57, 0.0 }
 0x345   :  { %v604_v16 = vpack.c.bf16 %v594_v14, %v593_v13 }
 0x347   :  { %707 = vmatmul.bf16.gmra.mxu0 %v604_v16 }
 0x348   :  { %v573_v18 = vpop.f32.mrf.mxu3 }
 0x349   :  { %v574_v21 = vadd.f32 %v1048_v34, %v573_v18 }
 0x34b   :  { %v595_v24 = vmax.f32 %v574_v21, 0.0 }
 0x350   :  { %v575_v22 = vpop.f32.mrf.mxu3 }
 0x351   :  { %v576_v23 = vadd.f32 %v1048_v34, %v575_v22 }
 0x353   :  { %v596_v25 = vmax.f32 %v576_v23, 0.0 }
 0x355   :  { %v605_v26 = vpack.c.bf16 %v596_v25, %v595_v24 }
 0x357   :  { %712 = vmatmul.bf16.gmra.mxu0 %v605_v26 }
 0x358   :  { %v578_v27 = vpop.f32.mrf.mxu3 }
 0x359   :  { %v579_v28 = vadd.f32 %v1048_v34, %v578_v27 }
 0x35b   :  { %v597_v31 = vmax.f32 %v579_v28, 0.0 }
 0x360   :  { %v580_v29 = vpop.f32.mrf.mxu3 }
 0x361   :  { %v581_v30 = vadd.f32 %v1048_v34, %v580_v29 }
 0x363   :  { %v598_v32 = vmax.f32 %v581_v30, 0.0 }
 0x365   :  { %v606_v33 = vpack.c.bf16 %v598_v32, %v597_v31 }
 0x367   :  { %717 = vmatmul.bf16.gmra.mxu0 %v606_v33 }
 0x374   :  { %v683_v35 = vpop.f32.mrf.mxu0 }
 0x37c   :  { %v685_v36 = vpop.f32.mrf.mxu0 }
 0x37d   :  { %v723_v37 = vpack.c.bf16 %v685_v36, %v683_v35 }
 0x384   :  { %v688_v38 = vpop.f32.mrf.mxu0 }
 0x38c   :  { %v690_v39 = vpop.f32.mrf.mxu0 }
 0x38d   :  { %v724_v40 = vpack.c.bf16 %v690_v39, %v688_v38 }
 0x394   :  { %v693_v41 = vpop.f32.mrf.mxu0 }
 0x39c   :  { %v695_v42 = vpop.f32.mrf.mxu0 }
 0x39d   :  { %v725_v43 = vpack.c.bf16 %v695_v42, %v693_v41 }
 0x3a4   :  { %v698_v44 = vpop.f32.mrf.mxu0 }
 0x3ac   :  { %v700_v45 = vpop.f32.mrf.mxu0 }
 0x3ad   :  { %v726_v46 = vpack.c.bf16 %v700_v45, %v698_v44 }
 0x3b4   :  { %v703_v47 = vpop.f32.mrf.mxu0 }
 0x3bc   :  { %v705_v48 = vpop.f32.mrf.mxu0 }
 0x3bd   :  { %v727_v58 = vpack.c.bf16 %v705_v48, %v703_v47 }
 0x3c4   :  { %v708_v49 = vpop.f32.mrf.mxu0 }
 0x3cc   :  { %v710_v34 = vpop.f32.mrf.mxu0 }
 0x3cd   :  { %v728_v56 = vpack.c.bf16 %v710_v34, %v708_v49 }
 0x3d4   :  { %v713_v50 = vpop.f32.mrf.mxu0 }
 0x3dc   :  { %v715_v51 = vpop.f32.mrf.mxu0 }
 0x3dd   :  { %v729_v55 = vpack.c.bf16 %v715_v51, %v713_v50 }
 0x3e4   :  { %v718_v52 = vpop.f32.mrf.mxu0 }
 0x3ec   :  { %v720_v53 = vpop.f32.mrf.mxu0 }
 0x3ed   :  { %v730_v54 = vpack.c.bf16 %v720_v53, %v718_v52 }
 0x3ef   :  { %734 = vmatpush.bf16.msrb.mxu1 %v730_v54 }
 0x3f3   :  { %735 = vmatpush.bf16.msrb.mxu1 %v729_v55 }
 0x3f7   :  { %736 = vmatpush.bf16.msrb.mxu1 %v728_v56 }
 0x3fb   :  { %737 = vmatpush.bf16.msrb.mxu1 %v727_v58 }
 0x3ff   :  { %738 = vmatpush.bf16.msrb.mxu1 %v726_v46 }
 0x403   :  { %739 = vmatpush.bf16.msrb.mxu1 %v725_v43 }
 0x407   :  { %740 = vmatpush.bf16.msrb.mxu1 %v724_v40 }
 0x40b   :  { %741 = vmatpush.bf16.msrb.mxu1 %v723_v37 }
 0x40e   :  { %742 = vmatmul.bf16.vlgmr.msrb.gmra.mxu1 %v1226_v8 }
 0x41e   :  { %747 = vmatmul.bf16.gmra.mxu1 %v1232_v10 }
 0x42e   :  { %752 = vmatmul.bf16.gmra.mxu1 %v1238_v15 }
 0x43e   :  { %757 = vmatmul.bf16.gmra.mxu1 %v1244_v19 }
 0x44e   :  { %762 = vmatmul.bf16.gmra.mxu1 %v1229_v9 }
 0x45e   :  { %767 = vmatmul.bf16.gmra.mxu1 %v1235_v11 }
 0x46e   :  { %772 = vmatmul.bf16.gmra.mxu1 %v1240_v17 }
 0x47e   :  { %777 = vmatmul.bf16.gmra.mxu1 %v1246_v20 }
 0x48b   :  { %v743_v60 = vpop.f32.mrf.mxu1 }
 0x48c   :  { %v744_v61 = vadd.f32 %v1049_v59, %v743_v60 }
 0x48e   :  { %783 = vst [vmem:[#allocation10] sm:$0xff] %v744_v61 }
 0x493   :  { %v745_v62 = vpop.f32.mrf.mxu1 }
 0x494   :  { %v746_v8 = vadd.f32 %v1049_v59, %v745_v62 }
 0x496   :  { %784 = vst [vmem:[#allocation10 + $0x8] sm:$0xff] %v746_v8 }
 0x49b   :  { %v748_v10 = vpop.f32.mrf.mxu1 }
 0x49c   :  { %v749_v63 = vadd.f32 %v1049_v59, %v748_v10 }
 0x49e   :  { %785 = vst [vmem:[#allocation10 + $0x10] sm:$0xff] %v749_v63 }
 0x4a3   :  { %v750_v15 = vpop.f32.mrf.mxu1 }
 0x4a4   :  { %v751_v19 = vadd.f32 %v1049_v59, %v750_v15 }
 0x4a6   :  { %786 = vst [vmem:[#allocation10 + $0x18] sm:$0xff] %v751_v19 }
 0x4ab   :  { %v753_v9 = vpop.f32.mrf.mxu1 }
 0x4ac   :  { %v754_v0 = vadd.f32 %v1049_v59, %v753_v9 }
 0x4ae   :  { %787 = vst [vmem:[#allocation10 + $0x20] sm:$0xff] %v754_v0 }
 0x4b3   :  { %v755_v11 = vpop.f32.mrf.mxu1 }
 0x4b4   :  { %v756_v17 = vadd.f32 %v1049_v59, %v755_v11 }
 0x4b6   :  { %788 = vst [vmem:[#allocation10 + $0x28] sm:$0xff] %v756_v17 }
 0x4bb   :  { %v758_v20 = vpop.f32.mrf.mxu1 }
 0x4bc   :  { %v759_v1 = vadd.f32 %v1049_v59, %v758_v20 }
 0x4be   :  { %789 = vst [vmem:[#allocation10 + $0x30] sm:$0xff] %v759_v1 }
 0x4c3   :  { %v760_v2 = vpop.f32.mrf.mxu1 }
 0x4c4   :  { %v761_v3 = vadd.f32 %v1049_v59, %v760_v2 }
 0x4c6   :  { %790 = vst [vmem:[#allocation10 + $0x38] sm:$0xff] %v761_v3 }
 0x4cb   :  { %v763_v4 = vpop.f32.mrf.mxu1 }
 0x4cc   :  { %v764_v5 = vadd.f32 %v1049_v59, %v763_v4 }
 0x4ce   :  { %791 = vst [vmem:[#allocation10 + $0x40] sm:$0xff] %v764_v5 }
 0x4d3   :  { %v765_v6 = vpop.f32.mrf.mxu1 }
 0x4d4   :  { %v766_v7 = vadd.f32 %v1049_v59, %v765_v6 }
 0x4d6   :  { %792 = vst [vmem:[#allocation10 + $0x48] sm:$0xff] %v766_v7 }
 0x4db   :  { %v768_v12 = vpop.f32.mrf.mxu1 }
 0x4dc   :  { %v769_v57 = vadd.f32 %v1049_v59, %v768_v12 }
 0x4de   :  { %793 = vst [vmem:[#allocation10 + $0x50] sm:$0xff] %v769_v57 }
 0x4e3   :  { %v770_v13 = vpop.f32.mrf.mxu1 }
 0x4e4   :  { %v771_v14 = vadd.f32 %v1049_v59, %v770_v13 }
 0x4e6   :  { %794 = vst [vmem:[#allocation10 + $0x58] sm:$0xff] %v771_v14 }
 0x4eb   :  { %v773_v16 = vpop.f32.mrf.mxu1 }
 0x4ec   :  { %v774_v18 = vadd.f32 %v1049_v59, %v773_v16 }
 0x4ee   :  { %795 = vst [vmem:[#allocation10 + $0x60] sm:$0xff] %v774_v18 }
 0x4f3   :  { %v775_v21 = vpop.f32.mrf.mxu1 }
 0x4f4   :  { %v776_v22 = vadd.f32 %v1049_v59, %v775_v21 }
 0x4f6   :  { %796 = vst [vmem:[#allocation10 + $0x68] sm:$0xff] %v776_v22 }
 0x4fb   :  { %v778_v23 = vpop.f32.mrf.mxu1 }
 0x4fc   :  { %v779_v24 = vadd.f32 %v1049_v59, %v778_v23 }
 0x4fe   :  { %797 = vst [vmem:[#allocation10 + $0x70] sm:$0xff] %v779_v24 }
 0x503   :  { %v780_v25 = vpop.f32.mrf.mxu1 }
 0x504   :  { %v781_v26 = vadd.f32 %v1049_v59, %v780_v25 }
 0x506   :  { %798 = vst [vmem:[#allocation10 + $0x78] sm:$0xff] %v781_v26 }
 0x507   :  { %811 = dma.vmem_to_hbm [thread:$0]  %s804_s3, 2048, %s806_s13, [#allocation4], %s1187_s14, %s1187_s14, %s1188_s15  }
 0x508   :  { %1176 = dma.done.wait [#allocation4], 2048  }
 0x509   :  { %1177 = vsyncadd [#allocation4], 4294965248 }
 0x50a   :  { %816 = vsyncpa [#allocation3], 1 }
 0x50b   :  { %817 = vsyncpa [#allocation6], 1 }
 0x50c   :  { %818 = vsyncpa [#allocation9], 1 }
 0x50d   :  { %819 = vsyncpa [#allocation4], 1 }

</bundles_post_ra>
